<compile_context>
chip_gen: v5e
topology: v5e:2x2
jax: 0.10.0
libtpu: 0.0.40
codegen_flags: <defaults>
</compile_context>

<pallas_src>
import functools

import jax
import jax.numpy as jnp
from jax.experimental import pallas as pl
from jax.experimental.pallas import tpu as pltpu

LANE = 128        # lane width of a vreg
SUBLANE = 8       # sublane count of a (32-bit) vreg
MAX_BLOCK_B = 2048  # default batch-tile cap (total VMEM use ~3 MiB at hidden=128)


def _round_up(n, m):
    return (n + m - 1) // m * m


# ---------------------------------------------------------------------------
# Kernels
# ---------------------------------------------------------------------------

def _layer1_relu(x_ref, w1_ref, b1_ref):
    """Linear(n_obs -> H) + ReLU.  VPU broadcast-MAC when n_obs is tiny."""
    tb, n_obs = x_ref.shape
    hidden = w1_ref.shape[1]
    if n_obs <= 8:
        # K is tiny: 4 VPU mul/adds instead of an MXU pass (frees MXU, no K padding).
        x = x_ref[...].astype(jnp.float32)
        w1 = w1_ref[...].astype(jnp.float32)
        acc = jnp.zeros((tb, hidden), jnp.float32)
        for k in range(n_obs):                       # static unroll, n_obs is small
            acc = acc + x[:, k:k + 1] * w1[k:k + 1, :]
        h1 = acc + b1_ref[...]
    else:
        cdt = w1_ref.dtype
        h1 = jnp.dot(x_ref[...].astype(cdt), w1_ref[...],
                     preferred_element_type=jnp.float32) + b1_ref[...]
    return jnp.maximum(h1, 0.0)


def _dqn_core(x_ref, w1_ref, b1_ref, w2_ref, b2_ref, w3_ref, b3_ref):
    """Shared 3-layer MLP body.  Matmuls in the weight dtype, f32 accumulation;
    bias-add / ReLU stay f32 (v5e-safe: no bf16 VPU there)."""
    cdt = w2_ref.dtype
    h1 = _layer1_relu(x_ref, w1_ref, b1_ref)                       # (tb, H) f32
    h2 = jnp.dot(h1.astype(cdt), w2_ref[...],
                 preferred_element_type=jnp.float32) + b2_ref[...]
    h2 = jnp.maximum(h2, 0.0)
    q = jnp.dot(h2.astype(cdt), w3_ref[...],
                preferred_element_type=jnp.float32) + b3_ref[...]
    return q                                                       # (tb, A) f32


def dqn_q_kernel(x_ref, w1_ref, b1_ref, w2_ref, b2_ref, w3_ref, b3_ref, out_ref):
    q = _dqn_core(x_ref, w1_ref, b1_ref, w2_ref, b2_ref, w3_ref, b3_ref)
    out_ref[...] = q.astype(out_ref.dtype)        # narrow (tb, n_actions) store


def dqn_greedy_kernel(x_ref, w1_ref, b1_ref, w2_ref, b2_ref, w3_ref, b3_ref,
                      act_ref, maxq_ref):
    q = _dqn_core(x_ref, w1_ref, b1_ref, w2_ref, b2_ref, w3_ref, b3_ref)
    q_max = jnp.max(q, axis=-1, keepdims=True)                      # XLU reduce
    idx = jax.lax.broadcasted_iota(jnp.int32, q.shape, 1)
    first_max = jnp.min(jnp.where(q >= q_max, idx, q.shape[-1]),
                        axis=-1, keepdims=True)                     # first argmax
    act_ref[...] = first_max.astype(jnp.int32)
    maxq_ref[...] = q_max.astype(maxq_ref.dtype)


# ---------------------------------------------------------------------------
# Wrappers
# ---------------------------------------------------------------------------

def _prepare(x, params, block_b, compute_dtype):
    w1, b1, w2, b2, w3, b3 = params
    B, n_obs = x.shape

    if compute_dtype is not None:
        # Cast the stream that actually moves bytes (x) and the matmul weights.
        x = x.astype(compute_dtype)
        w1 = w1.astype(compute_dtype)
        w2 = w2.astype(compute_dtype)
        w3 = w3.astype(compute_dtype)
    # Biases stay f32: added to the f32 accumulator.
    b1 = b1.astype(jnp.float32)
    b2 = b2.astype(jnp.float32)
    b3 = b3.astype(jnp.float32)

    b8 = _round_up(B, SUBLANE)
    if block_b is None:
        # >= 2 grid steps whenever the batch allows it (both v7x TensorCores busy),
        # capped at MAX_BLOCK_B to amortize ~0.35us per-step overhead on big batches.
        block_b = min(MAX_BLOCK_B, max(SUBLANE, _round_up(pl.cdiv(b8, 2), SUBLANE)))
    block_b = _round_up(block_b, SUBLANE)
    b_pad = _round_up(B, block_b)
    if b_pad != B:
        x = jnp.pad(x, ((0, b_pad - B), (0, 0)))
    grid = (b_pad // block_b,)

    # Constant index_map -> weights/biases DMA'd once, resident across grid steps.
    resident = lambda a: pl.BlockSpec(a.shape, lambda i: (0,) * a.ndim)
    in_specs = [
        pl.BlockSpec((block_b, n_obs), lambda i: (i, 0)),   # x: batch-tiled
        resident(w1), resident(b1),
        resident(w2), resident(b2),
        resident(w3), resident(b3),
    ]
    args = (x, w1, b1, w2, b2, w3, b3)
    return args, in_specs, grid, block_b, b_pad, B


@functools.partial(jax.jit, static_argnames=("block_b", "compute_dtype", "out_dtype"))
def dqn_forward(x, params, *, block_b=None, compute_dtype=None, out_dtype=jnp.float32):
    """Fused DQN forward.  x: (B, n_observations).  Returns (B, n_actions) Q-values."""
    n_actions = params[4].shape[1]            # w3: (hidden, n_actions)
    args, in_specs, grid, block_b, b_pad, B = _prepare(x, params, block_b, compute_dtype)

    out = pl.pallas_call(
        dqn_q_kernel,
        out_shape=jax.ShapeDtypeStruct((b_pad, n_actions), out_dtype),
        grid=grid,
        in_specs=in_specs,
        out_specs=pl.BlockSpec((block_b, n_actions), lambda i: (i, 0)),
        compiler_params=pltpu.CompilerParams(
            dimension_semantics=("parallel",)),   # shards batch tiles across TCs
    )(*args)
    return out if b_pad == B else out[:B]


@functools.partial(jax.jit, static_argnames=("block_b", "compute_dtype"))
def dqn_greedy(x, params, *, block_b=None, compute_dtype=None):
    """Fused DQN forward + greedy head: returns (action int32 (B,), max_q f32 (B,))."""
    args, in_specs, grid, block_b, b_pad, B = _prepare(x, params, block_b, compute_dtype)

    action, max_q = pl.pallas_call(
        dqn_greedy_kernel,
        out_shape=(jax.ShapeDtypeStruct((b_pad, 1), jnp.int32),
                   jax.ShapeDtypeStruct((b_pad, 1), jnp.float32)),
        grid=grid,
        in_specs=in_specs,
        out_specs=(pl.BlockSpec((block_b, 1), lambda i: (i, 0)),
                   pl.BlockSpec((block_b, 1), lambda i: (i, 0))),
        compiler_params=pltpu.CompilerParams(
            dimension_semantics=("parallel",)),
    )(*args)
    return action[:B, 0], max_q[:B, 0]


# ---------------------------------------------------------------------------
# Init / reference
# ---------------------------------------------------------------------------

def init_dqn_params(key, n_observations, n_actions, hidden=128):
    """PyTorch nn.Linear-style init: U(-1/sqrt(fan_in), 1/sqrt(fan_in)).

    Weights stored (in_features, out_features) so the kernel computes x @ W + b
    (== x @ W_pt.T + b for PyTorch's (out, in) layout)."""
    ks = jax.random.split(key, 6)

    def linear(kw, kb, fan_in, fan_out):
        bound = 1.0 / jnp.sqrt(jnp.float32(fan_in))
        w = jax.random.uniform(kw, (fan_in, fan_out), jnp.float32, -bound, bound)
        b = jax.random.uniform(kb, (1, fan_out), jnp.float32, -bound, bound)
        return w, b

    w1, b1 = linear(ks[0], ks[1], n_observations, hidden)
    w2, b2 = linear(ks[2], ks[3], hidden, hidden)
    w3, b3 = linear(ks[4], ks[5], hidden, n_actions)
    return (w1, b1, w2, b2, w3, b3)


def _reference(x, params):
    w1, b1, w2, b2, w3, b3 = params
    h = jnp.maximum(x @ w1 + b1, 0.0)
    h = jnp.maximum(h @ w2 + b2, 0.0)
    return h @ w3 + b3


if __name__ == "__main__":
    # Flywheel-balance env: small observation vector, discrete torque actions.
    n_observations = 4
    n_actions = 3

    key = jax.random.PRNGKey(0)
    k_params, k_x1, k_x2 = jax.random.split(key, 3)
    params = init_dqn_params(k_params, n_observations, n_actions)

    # 1) Tiny acting-path batch (B=2): padded to 8 sublanes internally, narrow output.
    x_small = jax.random.normal(k_x1, (2, n_observations), dtype=jnp.float32)
    q_small = dqn_forward(x_small, params)
    jax.block_until_ready(q_small)
    q_ref_small = _reference(x_small, params)
    assert q_small.shape == (2, n_actions)
    assert jnp.allclose(q_small, q_ref_small, atol=1e-5, rtol=1e-5)

    # 2) Fused greedy head: argmax action + max-Q straight out of the kernel.
    act, maxq = dqn_greedy(x_small, params)
    jax.block_until_ready((act, maxq))
    assert act.shape == (2,) and maxq.shape == (2,)
    assert jnp.allclose(maxq, jnp.max(q_ref_small, axis=-1), atol=1e-5, rtol=1e-5)
    picked = jnp.take_along_axis(q_ref_small, act[:, None].astype(jnp.int32), axis=1)[:, 0]
    assert jnp.allclose(picked, jnp.max(q_ref_small, axis=-1), atol=1e-4, rtol=1e-4)

    # 3) Training-style minibatch with an explicit multi-step batch grid.
    x_big = jax.random.normal(k_x2, (40, n_observations), dtype=jnp.float32)
    q_big = dqn_forward(x_big, params, block_b=16)   # grid = (3,), B padded 40 -> 48
    jax.block_until_ready(q_big)
    assert q_big.shape == (40, n_actions)
    assert jnp.allclose(q_big, _reference(x_big, params), atol=1e-5, rtol=1e-5)

    # 4) Default auto-tiling: batch split into two tiles (block_b=24, grid=(2,)).
    q_auto = dqn_forward(x_big, params)
    jax.block_until_ready(q_auto)
    assert jnp.allclose(q_auto, _reference(x_big, params), atol=1e-5, rtol=1e-5)

    # 5) bf16 I/O + matmul path (f32 accumulation & epilogue), bf16 output stream.
    q_bf16 = dqn_forward(x_big, params, compute_dtype=jnp.bfloat16,
                         out_dtype=jnp.bfloat16)
    jax.block_until_ready(q_bf16)
    assert q_bf16.shape == (40, n_actions)
    assert jnp.allclose(q_bf16.astype(jnp.float32), _reference(x_big, params),
                        atol=1e-1, rtol=1e-1)

    print("KERNEL_OK")
</pallas_src>

<mosaic_0001>
module attributes {stable_mosaic.version = 11 : i64} {
  func.func @dqn_q_kernel(%arg0: i32, %arg1: memref<8x4xf32, #tpu.memory_space<vmem>>, %arg2: memref<4x128xf32, #tpu.memory_space<vmem>>, %arg3: memref<1x128xf32, #tpu.memory_space<vmem>>, %arg4: memref<128x128xf32, #tpu.memory_space<vmem>>, %arg5: memref<1x128xf32, #tpu.memory_space<vmem>>, %arg6: memref<128x3xf32, #tpu.memory_space<vmem>>, %arg7: memref<1x3xf32, #tpu.memory_space<vmem>>, %arg8: memref<8x3xf32, #tpu.memory_space<vmem>>) attributes {dimension_semantics = [#tpu.dimension_semantics<parallel>], iteration_bounds = array<i64: 1>, scalar_prefetch = 0 : i64, scratch_operands = 0 : i64, tpu.core_type = #tpu.core_type<tc>, window_params = [{transform_indices = @transform_0, window_bounds = array<i64: 8, 4>}, {pipeline_mode = #tpu.pipeline_mode<synchronous>, transform_indices = @transform_1, window_bounds = array<i64: 4, 128>}, {pipeline_mode = #tpu.pipeline_mode<synchronous>, transform_indices = @transform_2, window_bounds = array<i64: 1, 128>}, {pipeline_mode = #tpu.pipeline_mode<synchronous>, transform_indices = @transform_3, window_bounds = array<i64: 128, 128>}, {pipeline_mode = #tpu.pipeline_mode<synchronous>, transform_indices = @transform_4, window_bounds = array<i64: 1, 128>}, {pipeline_mode = #tpu.pipeline_mode<synchronous>, transform_indices = @transform_5, window_bounds = array<i64: 128, 3>}, {pipeline_mode = #tpu.pipeline_mode<synchronous>, transform_indices = @transform_6, window_bounds = array<i64: 1, 3>}, {transform_indices = @transform_7, window_bounds = array<i64: 8, 3>}]} {
    %c0 = arith.constant 0 : index
    %c0_0 = arith.constant 0 : index
    %0 = vector.load %arg1[%c0, %c0_0] : memref<8x4xf32, #tpu.memory_space<vmem>>, vector<8x4xf32>
    %c0_1 = arith.constant 0 : index
    %c0_2 = arith.constant 0 : index
    %1 = vector.load %arg2[%c0_1, %c0_2] : memref<4x128xf32, #tpu.memory_space<vmem>>, vector<4x128xf32>
    %cst = arith.constant 0.000000e+00 : f32
    %2 = vector.broadcast %cst : f32 to vector<8x128xf32>
    %3 = vector.extract_strided_slice %0 {offsets = [0, 0], sizes = [8, 1], strides = [1, 1]} : vector<8x4xf32> to vector<8x1xf32>
    %4 = vector.extract_strided_slice %1 {offsets = [0, 0], sizes = [1, 128], strides = [1, 1]} : vector<4x128xf32> to vector<1x128xf32>
    %5 = vector.broadcast %3 : vector<8x1xf32> to vector<8x128xf32>
    %6 = vector.broadcast %4 : vector<1x128xf32> to vector<8x128xf32>
    %7 = arith.mulf %5, %6 : vector<8x128xf32>
    %8 = arith.addf %2, %7 : vector<8x128xf32>
    %9 = vector.extract_strided_slice %0 {offsets = [0, 1], sizes = [8, 1], strides = [1, 1]} : vector<8x4xf32> to vector<8x1xf32>
    %10 = vector.extract_strided_slice %1 {offsets = [1, 0], sizes = [1, 128], strides = [1, 1]} : vector<4x128xf32> to vector<1x128xf32>
    %11 = vector.broadcast %9 : vector<8x1xf32> to vector<8x128xf32>
    %12 = vector.broadcast %10 : vector<1x128xf32> to vector<8x128xf32>
    %13 = arith.mulf %11, %12 : vector<8x128xf32>
    %14 = arith.addf %8, %13 : vector<8x128xf32>
    %15 = vector.extract_strided_slice %0 {offsets = [0, 2], sizes = [8, 1], strides = [1, 1]} : vector<8x4xf32> to vector<8x1xf32>
    %16 = vector.extract_strided_slice %1 {offsets = [2, 0], sizes = [1, 128], strides = [1, 1]} : vector<4x128xf32> to vector<1x128xf32>
    %17 = vector.broadcast %15 : vector<8x1xf32> to vector<8x128xf32>
    %18 = vector.broadcast %16 : vector<1x128xf32> to vector<8x128xf32>
    %19 = arith.mulf %17, %18 : vector<8x128xf32>
    %20 = arith.addf %14, %19 : vector<8x128xf32>
    %21 = vector.extract_strided_slice %0 {offsets = [0, 3], sizes = [8, 1], strides = [1, 1]} : vector<8x4xf32> to vector<8x1xf32>
    %22 = vector.extract_strided_slice %1 {offsets = [3, 0], sizes = [1, 128], strides = [1, 1]} : vector<4x128xf32> to vector<1x128xf32>
    %23 = vector.broadcast %21 : vector<8x1xf32> to vector<8x128xf32>
    %24 = vector.broadcast %22 : vector<1x128xf32> to vector<8x128xf32>
    %25 = arith.mulf %23, %24 : vector<8x128xf32>
    %26 = arith.addf %20, %25 : vector<8x128xf32>
    %c0_3 = arith.constant 0 : index
    %c0_4 = arith.constant 0 : index
    %27 = vector.load %arg3[%c0_3, %c0_4] : memref<1x128xf32, #tpu.memory_space<vmem>>, vector<1x128xf32>
    %28 = vector.broadcast %27 : vector<1x128xf32> to vector<8x128xf32>
    %29 = arith.addf %26, %28 : vector<8x128xf32>
    %cst_5 = arith.constant 0.000000e+00 : f32
    %30 = vector.broadcast %cst_5 : f32 to vector<8x128xf32>
    %31 = arith.maximumf %29, %30 : vector<8x128xf32>
    %c0_6 = arith.constant 0 : index
    %c0_7 = arith.constant 0 : index
    %32 = vector.load %arg4[%c0_6, %c0_7] : memref<128x128xf32, #tpu.memory_space<vmem>>, vector<128x128xf32>
    %cst_8 = arith.constant dense<0.000000e+00> : vector<8x128xf32>
    %33 = tpu.matmul %31, %32, %cst_8 {dimension_numbers = #tpu.dot_dimension_numbers<[1], [0], [0], [1], [0, 0, 1, 1], [], []>} : vector<8x128xf32>, vector<128x128xf32>, vector<8x128xf32> -> vector<8x128xf32>
    %c0_9 = arith.constant 0 : index
    %c0_10 = arith.constant 0 : index
    %34 = vector.load %arg5[%c0_9, %c0_10] : memref<1x128xf32, #tpu.memory_space<vmem>>, vector<1x128xf32>
    %35 = vector.broadcast %34 : vector<1x128xf32> to vector<8x128xf32>
    %36 = arith.addf %33, %35 : vector<8x128xf32>
    %cst_11 = arith.constant 0.000000e+00 : f32
    %37 = vector.broadcast %cst_11 : f32 to vector<8x128xf32>
    %38 = arith.maximumf %36, %37 : vector<8x128xf32>
    %c0_12 = arith.constant 0 : index
    %c0_13 = arith.constant 0 : index
    %39 = vector.load %arg6[%c0_12, %c0_13] : memref<128x3xf32, #tpu.memory_space<vmem>>, vector<128x3xf32>
    %cst_14 = arith.constant dense<0.000000e+00> : vector<8x3xf32>
    %40 = tpu.matmul %38, %39, %cst_14 {dimension_numbers = #tpu.dot_dimension_numbers<[1], [0], [0], [1], [0, 0, 1, 1], [], []>} : vector<8x128xf32>, vector<128x3xf32>, vector<8x3xf32> -> vector<8x3xf32>
    %c0_15 = arith.constant 0 : index
    %c0_16 = arith.constant 0 : index
    %41 = vector.load %arg7[%c0_15, %c0_16] : memref<1x3xf32, #tpu.memory_space<vmem>>, vector<1x3xf32>
    %42 = vector.broadcast %41 : vector<1x3xf32> to vector<8x3xf32>
    %43 = arith.addf %40, %42 : vector<8x3xf32>
    %c0_17 = arith.constant 0 : index
    %c0_18 = arith.constant 0 : index
    %44 = vector.load %arg8[%c0_17, %c0_18] : memref<8x3xf32, #tpu.memory_space<vmem>>, vector<8x3xf32>
    tpu.vector_store %arg8[%c0_17, %c0_18], %43 {strides = array<i32>} : memref<8x3xf32, #tpu.memory_space<vmem>>, vector<8x3xf32>,
    return
  }
  func.func @transform_0(%arg0: i32) -> (i32, i32) {
    %c0_i32 = arith.constant 0 : i32
    %c0_i32_0 = arith.constant 0 : i32
    return %arg0, %c0_i32 : i32, i32
  }
  func.func @transform_1(%arg0: i32) -> (i32, i32) {
    %c0_i32 = arith.constant 0 : i32
    %c0_i32_0 = arith.constant 0 : i32
    %c0_i32_1 = arith.constant 0 : i32
    return %c0_i32, %c0_i32_0 : i32, i32
  }
  func.func @transform_2(%arg0: i32) -> (i32, i32) {
    %c0_i32 = arith.constant 0 : i32
    %c0_i32_0 = arith.constant 0 : i32
    %c0_i32_1 = arith.constant 0 : i32
    return %c0_i32, %c0_i32_0 : i32, i32
  }
  func.func @transform_3(%arg0: i32) -> (i32, i32) {
    %c0_i32 = arith.constant 0 : i32
    %c0_i32_0 = arith.constant 0 : i32
    %c0_i32_1 = arith.constant 0 : i32
    return %c0_i32, %c0_i32_0 : i32, i32
  }
  func.func @transform_4(%arg0: i32) -> (i32, i32) {
    %c0_i32 = arith.constant 0 : i32
    %c0_i32_0 = arith.constant 0 : i32
    %c0_i32_1 = arith.constant 0 : i32
    return %c0_i32, %c0_i32_0 : i32, i32
  }
  func.func @transform_5(%arg0: i32) -> (i32, i32) {
    %c0_i32 = arith.constant 0 : i32
    %c0_i32_0 = arith.constant 0 : i32
    %c0_i32_1 = arith.constant 0 : i32
    return %c0_i32, %c0_i32_0 : i32, i32
  }
  func.func @transform_6(%arg0: i32) -> (i32, i32) {
    %c0_i32 = arith.constant 0 : i32
    %c0_i32_0 = arith.constant 0 : i32
    %c0_i32_1 = arith.constant 0 : i32
    return %c0_i32, %c0_i32_0 : i32, i32
  }
  func.func @transform_7(%arg0: i32) -> (i32, i32) {
    %c0_i32 = arith.constant 0 : i32
    %c0_i32_0 = arith.constant 0 : i32
    return %arg0, %c0_i32 : i32, i32
  }
}

</mosaic_0001>

<bundles_post_ra>
// kernel: dqn_forward.1
= control target key start
LH: loop header
LB: loop body
LE: loop exit
PB: predicated region body
PF: predicated region fallthrough
CT: control target
= control target key end

     0   :  { %v162_v0 = vmov 0   ;;  %v163_v2 = vmov 2   ;;  %v164_v8 = vmov 1   ;;  %v165_v9 = vmov 3   ;;  %s320_s0 = inlined_call_operand.vmem [shape: f32[8,4], index: 0, kind: input, shape index: {}]   ;;  %s321_s3 = inlined_call_operand.vmem [shape: f32[128,128], index: 3, kind: input, shape index: {}]   ;;  %s322_s2 = inlined_call_operand.vmem [shape: f32[1,128], index: 2, kind: input, shape index: {}]   ;;  %s323_s4 = inlined_call_operand.vmem [shape: f32[1,128], index: 4, kind: input, shape index: {}]   ;;  %s324_s5 = inlined_call_operand.vmem [shape: f32[128,3], index: 5, kind: input, shape index: {}]   ;;  %s325_s1 = inlined_call_operand.vmem [shape: f32[4,128], index: 1, kind: input, shape index: {}]   ;;  %s326_s6 = inlined_call_operand.vmem [shape: f32[1,3], index: 6, kind: input, shape index: {}]   ;;  %s327_s7 = inlined_call_operand.vmem [shape: f32[8,3], index: 7, kind: output, shape index: {}]  }
   0x1   :  { %154 = vset.pattern.permute.xlu0 %v162_v0  ;;  %v26_v1 = vld [vmem:[%s320_s0] sm:$0xff]  ;;  %156 = vset.pattern.permute.xlu1 %v163_v2  ;;  %v78_v3 = vld [vmem:[%s321_s3 + $0x78] sm:$0xff]  ;;  %v77_v4 = vld [vmem:[%s321_s3 + $0x70] sm:$0xff]  ;;  %vm144_vm0 = vcmask 23552  }
   0x2   :  { %30 = vperm.xlu0 %154, %v26_v1   ;;  %44 = vperm.xlu1 %156, %v26_v1   ;;  %v76_v5 = vld [vmem:[%s321_s3 + $0x68] sm:$0xff]  ;;  %v75_v6 = vld [vmem:[%s321_s3 + $0x60] sm:$0xff]  ;;  %v74_v7 = vld [vmem:[%s321_s3 + $0x58] sm:$0xff] }
   0x3   :  { %83 = vmatpush.msra.mxu0 %v78_v3  ;;  %v73_v10 = vld [vmem:[%s321_s3 + $0x50] sm:$0xff]  ;;  %v72_v11 = vld [vmem:[%s321_s3 + $0x48] sm:$0xff]  ;;  %v71_v12 = vld [vmem:[%s321_s3 + $0x40] sm:$0xff] }
   0x4   :  { %v70_v13 = vld [vmem:[%s321_s3 + $0x38] sm:$0xff]  ;;  %v69_v14 = vld [vmem:[%s321_s3 + $0x30] sm:$0xff]  ;;  %v68_v15 = vld [vmem:[%s321_s3 + $0x28] sm:$0xff] }
   0x5   :  { %84 = vmatpush.msra.mxu0 %v77_v4  ;;  %v67_v16 = vld [vmem:[%s321_s3 + $0x20] sm:$0xff]  ;;  %v66_v17 = vld [vmem:[%s321_s3 + $0x18] sm:$0xff]  ;;  %v65_v18 = vld [vmem:[%s321_s3 + $0x10] sm:$0xff] }
   0x6   :  { %v64_v19 = vld [vmem:[%s321_s3 + $0x8] sm:$0xff]  ;;  %v63_v20 = vld [vmem:[%s321_s3] sm:$0xff]  ;;  %v119_v21 = vld [vmem:[%s324_s5 + $0x78] sm:$0xff] }
   0x7   :  { %85 = vmatpush.msra.mxu0 %v76_v5  ;;  %v118_v22 = vld [vmem:[%s324_s5 + $0x70] sm:$0xff]  ;;  %124 = vmatpush.msra.mxu1 %v119_v21  ;;  %v117_v23 = vld [vmem:[%s324_s5 + $0x68] sm:$0xff]  ;;  %v116_v24 = vld [vmem:[%s324_s5 + $0x60] sm:$0xff] }
   0x8   :  { %v115_v25 = vld [vmem:[%s324_s5 + $0x58] sm:$0xff]  ;;  %v114_v26 = vld [vmem:[%s324_s5 + $0x50] sm:$0xff]  ;;  %v113_v29 = vld [vmem:[%s324_s5 + $0x48] sm:$0xff] }
   0x9   :  { %86 = vmatpush.msra.mxu0 %v75_v6  ;;  %125 = vmatpush.msra.mxu1 %v118_v22  ;;  %v112_v30 = vld [vmem:[%s324_s5 + $0x40] sm:$0xff]  ;;  %v111_v32 = vld [vmem:[%s324_s5 + $0x38] sm:$0xff]  ;;  %v110_v35 = vld [vmem:[%s324_s5 + $0x30] sm:$0xff] }
   0xa   :  { %155 = vset.pattern.permute.xlu0 %v164_v8  ;;  %157 = vset.pattern.permute.xlu1 %v165_v9  ;;  %v27_v31 = vld [vmem:[%s325_s1] sm:$0xf]  ;;  %v109_v38 = vld [vmem:[%s324_s5 + $0x28] sm:$0xff]  ;;  %v107_v47 = vld [vmem:[%s324_s5 + $0x18] sm:$0xff] }
   0xb   :  { %37 = vperm.xlu0 %155, %v26_v1   ;;  %51 = vperm.xlu1 %157, %v26_v1   ;;  %v33_v33 = vperm.slane %v27_v31, 0  ;;  %v40_v34 = vperm.slane %v27_v31, 1  ;;  %v47_v36 = vperm.slane %v27_v31, 2  ;;  %v54_v37 = vperm.slane %v27_v31, 3  ;;  %v108_v43 = vld [vmem:[%s324_s5 + $0x20] sm:$0xff]  ;;  %v106_v53 = vld [vmem:[%s324_s5 + $0x10] sm:$0xff] }
   0xc   :  { %87 = vmatpush.msra.mxu0 %v74_v7  ;;  %126 = vmatpush.msra.mxu1 %v117_v23  ;;  %v159_v49 = vld [vmem:[%s322_s2] ss:$0 sm:$0xff]  ;;  %v105_v54 = vld [vmem:[%s324_s5 + $0x8] sm:$0xff] }
   0xd   :  { %v104_v55 = vld [vmem:[%s324_s5] sm:$0xff] }
   0xe   :  { %88 = vmatpush.msra.mxu0 %v73_v10  ;;  %127 = vmatpush.msra.mxu1 %v116_v24  ;;  %v160_v56 = vld [vmem:[%s323_s4] ss:$0 sm:$0xff] }
   0xf   :  { %v161_v60 = vld [vmem:[%s326_s6] ss:$0 sm:$0xff] }
  0x10   :  { %89 = vmatpush.msra.mxu0 %v72_v11  ;;  %128 = vmatpush.msra.mxu1 %v115_v25 }
  0x12   :  { %90 = vmatpush.msra.mxu0 %v71_v12  ;;  %129 = vmatpush.msra.mxu1 %v114_v26 }
  0x13   :  { %158 = vset.pattern.permute.xlu0 %v165_v9 }
  0x14   :  { %91 = vmatpush.msra.mxu0 %v70_v13  ;;  %130 = vmatpush.msra.mxu1 %v113_v29 }
  0x16   :  { %92 = vmatpush.msra.mxu0 %v69_v14  ;;  %131 = vmatpush.msra.mxu1 %v112_v30 }
  0x18   :  { %93 = vmatpush.msra.mxu0 %v68_v15  ;;  %132 = vmatpush.msra.mxu1 %v111_v32 }
  0x1a   :  { %94 = vmatpush.msra.mxu0 %v67_v16  ;;  %133 = vmatpush.msra.mxu1 %v110_v35 }
  0x1c   :  { %95 = vmatpush.msra.mxu0 %v66_v17  ;;  %134 = vmatpush.msra.mxu1 %v109_v38 }
  0x1e   :  { %96 = vmatpush.msra.mxu0 %v65_v18  ;;  %135 = vmatpush.msra.mxu1 %v108_v43 }
  0x20   :  { %97 = vmatpush.msra.mxu0 %v64_v19  ;;  %136 = vmatpush.msra.mxu1 %v107_v47 }
  0x22   :  { %98 = vmatpush.msra.mxu0 %v63_v20  ;;  %137 = vmatpush.msra.mxu1 %v106_v53 }
  0x24   :  { %138 = vmatpush.msra.mxu1 %v105_v54 }
  0x26   :  { %139 = vmatpush.msra.mxu1 %v104_v55 }
  0x74   :  { %v31_v27 = vpop.permute.xlu0 %30  ;;  %v45_v28 = vpop.permute.xlu1 %44 }
  0x75   :  { %v34_v41 = vmul.f32 %v33_v33, %v31_v27  ;;  %v48_v44 = vmul.f32 %v47_v36, %v45_v28 }
  0x7d   :  { %v38_v39 = vpop.permute.xlu0 %37  ;;  %v52_v40 = vpop.permute.xlu1 %51 }
  0x7e   :  { %v41_v42 = vmul.f32 %v40_v34, %v38_v39  ;;  %v55_v46 = vmul.f32 %v54_v37, %v52_v40 }
  0x80   :  { %v42_v45 = vadd.f32 %v41_v42, %v34_v41 }
  0x82   :  { %v49_v48 = vadd.f32 %v48_v44, %v42_v45 }
  0x84   :  { %v56_v50 = vadd.f32 %v55_v46, %v49_v48 }
  0x86   :  { %v61_v51 = vadd.f32 %v159_v49, %v56_v50 }
  0x88   :  { %v62_v52 = vmax.f32 %v61_v51, 0.0 }
  0x8a   :  { %99 = vmatmul.f32.vlgmr.msra.gmra.mxu0 %v62_v52 }
 0x107   :  { %v100_v57 = vpop.f32.mrf.mxu0 }
 0x108   :  { %v101_v58 = vadd.f32 %v160_v56, %v100_v57 }
 0x10a   :  { %v103_v59 = vmax.f32 %v101_v58, 0.0 }
 0x10c   :  { %140 = vmatmul.f32.vlgmr.msra.gmra.mxu1 %v103_v59 }
 0x189   :  { %v141_v61 = vpop.f32.mrf.mxu1 }
 0x18a   :  { %v142_v62 = vadd.f32 %v161_v60, %v141_v61 }
 0x18c   :  { %145 = vst.msk [vmem:[%s327_s7] sm:$0xff] %vm144_vm0, %v142_v62 }

</bundles_post_ra>
